<compile_context>
chip_gen: v7x
topology: tpu7x:2x2x1
jax: 0.10.0
libtpu: 0.0.40
codegen_flags: <defaults>
</compile_context>

<pallas_src>
import jax
import jax.numpy as jnp
from jax.experimental import pallas as pl
from jax.experimental.pallas import tpu as pltpu

SELU_ALPHA = 1.6732632423543772
SELU_SCALE = 1.0507009873554805


def _selu(x):
    # selu(x) = scale * (x if x > 0 else alpha * (exp(x) - 1))
    # exp(min(x, 0)) guards the discarded branch against overflow for large x.
    return SELU_SCALE * jnp.where(
        x > 0, x, SELU_ALPHA * (jnp.exp(jnp.minimum(x, 0.0)) - 1.0))


def mlp_kernel(state_ref, action_ref, *refs):
    """Fused MLP. refs = (w1s, w1a, b1, w2, b2, ..., wL, bL, out_ref).

    Layer 1 fuses the (state ⊕ action) concat into two matmuls.  SELU after
    every layer except the last.  Matmuls feed the MXU bf16 operands with
    f32 accumulation; bias add and SELU stay in f32.
    """
    out_ref = refs[-1]
    w1s_ref, w1a_ref, b1_ref = refs[0], refs[1], refs[2]
    rest = refs[3:-1]
    n_rest = len(rest) // 2

    h = (jnp.dot(state_ref[...].astype(jnp.bfloat16),
                 w1s_ref[...].astype(jnp.bfloat16),
                 preferred_element_type=jnp.float32)
         + jnp.dot(action_ref[...].astype(jnp.bfloat16),
                   w1a_ref[...].astype(jnp.bfloat16),
                   preferred_element_type=jnp.float32)
         + b1_ref[...])
    if n_rest > 0:
        h = _selu(h)

    for i in range(n_rest):
        w = rest[2 * i][...].astype(jnp.bfloat16)
        b = rest[2 * i + 1][...]
        h = jnp.dot(h.astype(jnp.bfloat16), w,
                    preferred_element_type=jnp.float32) + b
        if i < n_rest - 1:
            h = _selu(h)

    out_ref[...] = h.astype(out_ref.dtype)


def init_forward_model_params(key, num_state_dims, num_action_dims,
                              hidden_layer_sizes):
    """Deterministic init mimicking torch.nn.Linear default U(-1/sqrt(fan_in), +)."""
    layer_sizes = ([num_state_dims + num_action_dims]
                   + list(hidden_layer_sizes)
                   + [num_state_dims])
    params = []
    for fan_in, fan_out in zip(layer_sizes[:-1], layer_sizes[1:]):
        key, kw, kb = jax.random.split(key, 3)
        bound = 1.0 / jnp.sqrt(jnp.float32(fan_in))
        w = jax.random.uniform(kw, (fan_in, fan_out), jnp.float32, -bound, bound)
        b = jax.random.uniform(kb, (1, fan_out), jnp.float32, -bound, bound)
        params.append((w, b))
    return params


def _round_up(x, m):
    return ((x + m - 1) // m) * m


def forward_model_apply(state, action, params, tile_b=None):
    """Equivalent of ForwardModel.forward(state, action)."""
    B, Ds = state.shape
    Ba, Da = action.shape
    assert B == Ba, "state/action batch mismatch"
    n_layers = len(params)
    Dout = params[-1][0].shape[1]
    Dout_pad = _round_up(Dout, 128)  # lane-dense output slab

    # Batch tile: whole batch for tiny B; otherwise >= 2 grid steps (v7x
    # megacore) with at most 256 rows per step.
    if tile_b is None:
        if B <= 8:
            tile_b = 8
        else:
            tile_b = min(256, _round_up(-(-B // 2), 8))
    B_pad = _round_up(max(B, tile_b), tile_b)

    if B_pad != B:
        pad = B_pad - B
        state = jnp.pad(state, ((0, pad), (0, 0)))
        action = jnp.pad(action, ((0, pad), (0, 0)))

    # Split first-layer weight so the concat fuses into the first matmul.
    w1, b1 = params[0]
    w1s, w1a = w1[:Ds], w1[Ds:]

    if n_layers == 1:
        # Single layer: it is also the (lane-padded) output layer.
        w1s = jnp.pad(w1s, ((0, 0), (0, Dout_pad - Dout)))
        w1a = jnp.pad(w1a, ((0, 0), (0, Dout_pad - Dout)))
        b1 = jnp.pad(b1, ((0, 0), (0, Dout_pad - Dout)))
        flat = [w1s, w1a, b1]
    else:
        wL, bL = params[-1]
        wL = jnp.pad(wL, ((0, 0), (0, Dout_pad - Dout)))
        bL = jnp.pad(bL, ((0, 0), (0, Dout_pad - Dout)))
        flat = [w1s, w1a, b1]
        for (w, b) in params[1:-1]:
            flat.extend([w, b])
        flat.extend([wL, bL])

    in_specs = [
        pl.BlockSpec((tile_b, Ds), lambda i: (i, 0)),
        pl.BlockSpec((tile_b, Da), lambda i: (i, 0)),
    ]
    for p in flat:
        # Small parameters: full array, resident across every grid step.
        in_specs.append(pl.BlockSpec(p.shape, lambda i: (0, 0)))

    out_spec = pl.BlockSpec((tile_b, Dout_pad), lambda i: (i, 0))

    # Accurate cost hint for XLA's scheduler.
    layer_dims = [Ds + Da] + [w.shape[1] for (w, _) in params]
    flops = 2 * B_pad * sum(a * b for a, b in zip(layer_dims[:-1], layer_dims[1:]))
    transcendentals = B_pad * sum(layer_dims[1:-1])  # one exp per SELU element
    bytes_accessed = 4 * (B_pad * (Ds + Da + Dout_pad)
                          + sum(int(p.size) for p in flat))
    cost = pl.CostEstimate(flops=flops, transcendentals=transcendentals,
                           bytes_accessed=bytes_accessed)

    call = pl.pallas_call(
        mlp_kernel,
        out_shape=jax.ShapeDtypeStruct((B_pad, Dout_pad), jnp.float32),
        grid=(B_pad // tile_b,),
        in_specs=in_specs,
        out_specs=out_spec,
        compiler_params=pltpu.CompilerParams(
            dimension_semantics=("parallel",)),
        cost_estimate=cost,
    )
    out = call(state, action, *flat)
    return out[:B, :Dout]


def reference_apply(state, action, params):
    """Pure-JAX f32 reference for correctness check."""
    h = jnp.concatenate([state, action], axis=1)
    n = len(params)
    for i, (w, b) in enumerate(params):
        h = h @ w + b
        if i < n - 1:
            h = _selu(h)
    return h


if __name__ == "__main__":
    # Small shapes consistent with the module: batch=8, state dims=16,
    # action dims=8, hidden layers [32, 32].
    num_state_dims = 16
    num_action_dims = 8
    hidden_layer_sizes = [32, 32]
    batch = 8

    key = jax.random.PRNGKey(0)
    k_state, k_action, k_params = jax.random.split(key, 3)

    state = jax.random.normal(k_state, (batch, num_state_dims), jnp.float32)
    action = jax.random.normal(k_action, (batch, num_action_dims), jnp.float32)

    params = init_forward_model_params(
        k_params, num_state_dims, num_action_dims, hidden_layer_sizes)

    out = forward_model_apply(state, action, params)
    out = jax.block_until_ready(out)

    ref = reference_apply(state, action, params)
    assert out.shape == (batch, num_state_dims)
    # bf16 MXU operands (f32 accumulation) => relative error ~4e-3 per product;
    # 5e-2 absolute/relative comfortably bounds it at these layer widths.
    assert jnp.allclose(out, ref, atol=5e-2, rtol=5e-2), "mismatch vs reference"

    print("KERNEL_OK")
</pallas_src>

<mosaic_0001>
module attributes {stable_mosaic.version = 11 : i64} {
  func.func @mlp_kernel(%arg0: i32, %arg1: memref<8x16xf32, #tpu.memory_space<vmem>>, %arg2: memref<8x8xf32, #tpu.memory_space<vmem>>, %arg3: memref<16x32xf32, #tpu.memory_space<vmem>>, %arg4: memref<8x32xf32, #tpu.memory_space<vmem>>, %arg5: memref<1x32xf32, #tpu.memory_space<vmem>>, %arg6: memref<32x32xf32, #tpu.memory_space<vmem>>, %arg7: memref<1x32xf32, #tpu.memory_space<vmem>>, %arg8: memref<32x128xf32, #tpu.memory_space<vmem>>, %arg9: memref<1x128xf32, #tpu.memory_space<vmem>>, %arg10: memref<8x128xf32, #tpu.memory_space<vmem>>) attributes {dimension_semantics = [#tpu.dimension_semantics<parallel>], iteration_bounds = array<i64: 1>, scalar_prefetch = 0 : i64, scratch_operands = 0 : i64, tpu.core_type = #tpu.core_type<tc>, window_params = [{transform_indices = @transform_0, window_bounds = array<i64: 8, 16>}, {transform_indices = @transform_1, window_bounds = array<i64: 8, 8>}, {pipeline_mode = #tpu.pipeline_mode<synchronous>, transform_indices = @transform_2, window_bounds = array<i64: 16, 32>}, {pipeline_mode = #tpu.pipeline_mode<synchronous>, transform_indices = @transform_3, window_bounds = array<i64: 8, 32>}, {pipeline_mode = #tpu.pipeline_mode<synchronous>, transform_indices = @transform_4, window_bounds = array<i64: 1, 32>}, {pipeline_mode = #tpu.pipeline_mode<synchronous>, transform_indices = @transform_5, window_bounds = array<i64: 32, 32>}, {pipeline_mode = #tpu.pipeline_mode<synchronous>, transform_indices = @transform_6, window_bounds = array<i64: 1, 32>}, {pipeline_mode = #tpu.pipeline_mode<synchronous>, transform_indices = @transform_7, window_bounds = array<i64: 32, 128>}, {pipeline_mode = #tpu.pipeline_mode<synchronous>, transform_indices = @transform_8, window_bounds = array<i64: 1, 128>}, {transform_indices = @transform_9, window_bounds = array<i64: 8, 128>}]} {
    %c0 = arith.constant 0 : index
    %c0_0 = arith.constant 0 : index
    %0 = vector.load %arg1[%c0, %c0_0] : memref<8x16xf32, #tpu.memory_space<vmem>>, vector<8x16xf32>
    %1 = arith.truncf %0 : vector<8x16xf32> to vector<8x16xbf16>
    %c0_1 = arith.constant 0 : index
    %c0_2 = arith.constant 0 : index
    %2 = vector.load %arg3[%c0_1, %c0_2] : memref<16x32xf32, #tpu.memory_space<vmem>>, vector<16x32xf32>
    %3 = arith.truncf %2 : vector<16x32xf32> to vector<16x32xbf16>
    %cst = arith.constant dense<0.000000e+00> : vector<8x32xf32>
    %4 = tpu.matmul %1, %3, %cst {dimension_numbers = #tpu.dot_dimension_numbers<[1], [0], [0], [1], [0, 0, 1, 1], [], []>} : vector<8x16xbf16>, vector<16x32xbf16>, vector<8x32xf32> -> vector<8x32xf32>
    %c0_3 = arith.constant 0 : index
    %c0_4 = arith.constant 0 : index
    %5 = vector.load %arg2[%c0_3, %c0_4] : memref<8x8xf32, #tpu.memory_space<vmem>>, vector<8x8xf32>
    %6 = arith.truncf %5 : vector<8x8xf32> to vector<8x8xbf16>
    %c0_5 = arith.constant 0 : index
    %c0_6 = arith.constant 0 : index
    %7 = vector.load %arg4[%c0_5, %c0_6] : memref<8x32xf32, #tpu.memory_space<vmem>>, vector<8x32xf32>
    %8 = arith.truncf %7 : vector<8x32xf32> to vector<8x32xbf16>
    %cst_7 = arith.constant dense<0.000000e+00> : vector<8x32xf32>
    %9 = tpu.matmul %6, %8, %cst_7 {dimension_numbers = #tpu.dot_dimension_numbers<[1], [0], [0], [1], [0, 0, 1, 1], [], []>} : vector<8x8xbf16>, vector<8x32xbf16>, vector<8x32xf32> -> vector<8x32xf32>
    %10 = arith.addf %4, %9 : vector<8x32xf32>
    %c0_8 = arith.constant 0 : index
    %c0_9 = arith.constant 0 : index
    %11 = vector.load %arg5[%c0_8, %c0_9] : memref<1x32xf32, #tpu.memory_space<vmem>>, vector<1x32xf32>
    %12 = vector.broadcast %11 : vector<1x32xf32> to vector<8x32xf32>
    %13 = arith.addf %10, %12 : vector<8x32xf32>
    %cst_10 = arith.constant 0.000000e+00 : f32
    %14 = vector.broadcast %cst_10 : f32 to vector<8x32xf32>
    %15 = arith.cmpf ogt, %13, %14 : vector<8x32xf32>
    %cst_11 = arith.constant 0.000000e+00 : f32
    %16 = vector.broadcast %cst_11 : f32 to vector<8x32xf32>
    %17 = arith.minimumf %13, %16 : vector<8x32xf32>
    %18 = math.exp %17 : vector<8x32xf32>
    %cst_12 = arith.constant 1.000000e+00 : f32
    %19 = vector.broadcast %cst_12 : f32 to vector<8x32xf32>
    %20 = arith.subf %18, %19 : vector<8x32xf32>
    %cst_13 = arith.constant 1.67326319 : f32
    %21 = vector.broadcast %cst_13 : f32 to vector<8x32xf32>
    %22 = arith.mulf %21, %20 : vector<8x32xf32>
    %23 = arith.select %15, %13, %22 : vector<8x32xi1>, vector<8x32xf32>
    %cst_14 = arith.constant 1.05070102 : f32
    %24 = vector.broadcast %cst_14 : f32 to vector<8x32xf32>
    %25 = arith.mulf %24, %23 : vector<8x32xf32>
    %c0_15 = arith.constant 0 : index
    %c0_16 = arith.constant 0 : index
    %26 = vector.load %arg6[%c0_15, %c0_16] : memref<32x32xf32, #tpu.memory_space<vmem>>, vector<32x32xf32>
    %27 = arith.truncf %26 : vector<32x32xf32> to vector<32x32xbf16>
    %c0_17 = arith.constant 0 : index
    %c0_18 = arith.constant 0 : index
    %28 = vector.load %arg7[%c0_17, %c0_18] : memref<1x32xf32, #tpu.memory_space<vmem>>, vector<1x32xf32>
    %29 = arith.truncf %25 : vector<8x32xf32> to vector<8x32xbf16>
    %cst_19 = arith.constant dense<0.000000e+00> : vector<8x32xf32>
    %30 = tpu.matmul %29, %27, %cst_19 {dimension_numbers = #tpu.dot_dimension_numbers<[1], [0], [0], [1], [0, 0, 1, 1], [], []>} : vector<8x32xbf16>, vector<32x32xbf16>, vector<8x32xf32> -> vector<8x32xf32>
    %31 = vector.broadcast %28 : vector<1x32xf32> to vector<8x32xf32>
    %32 = arith.addf %30, %31 : vector<8x32xf32>
    %cst_20 = arith.constant 0.000000e+00 : f32
    %33 = vector.broadcast %cst_20 : f32 to vector<8x32xf32>
    %34 = arith.cmpf ogt, %32, %33 : vector<8x32xf32>
    %cst_21 = arith.constant 0.000000e+00 : f32
    %35 = vector.broadcast %cst_21 : f32 to vector<8x32xf32>
    %36 = arith.minimumf %32, %35 : vector<8x32xf32>
    %37 = math.exp %36 : vector<8x32xf32>
    %cst_22 = arith.constant 1.000000e+00 : f32
    %38 = vector.broadcast %cst_22 : f32 to vector<8x32xf32>
    %39 = arith.subf %37, %38 : vector<8x32xf32>
    %cst_23 = arith.constant 1.67326319 : f32
    %40 = vector.broadcast %cst_23 : f32 to vector<8x32xf32>
    %41 = arith.mulf %40, %39 : vector<8x32xf32>
    %42 = arith.select %34, %32, %41 : vector<8x32xi1>, vector<8x32xf32>
    %cst_24 = arith.constant 1.05070102 : f32
    %43 = vector.broadcast %cst_24 : f32 to vector<8x32xf32>
    %44 = arith.mulf %43, %42 : vector<8x32xf32>
    %c0_25 = arith.constant 0 : index
    %c0_26 = arith.constant 0 : index
    %45 = vector.load %arg8[%c0_25, %c0_26] : memref<32x128xf32, #tpu.memory_space<vmem>>, vector<32x128xf32>
    %46 = arith.truncf %45 : vector<32x128xf32> to vector<32x128xbf16>
    %c0_27 = arith.constant 0 : index
    %c0_28 = arith.constant 0 : index
    %47 = vector.load %arg9[%c0_27, %c0_28] : memref<1x128xf32, #tpu.memory_space<vmem>>, vector<1x128xf32>
    %48 = arith.truncf %44 : vector<8x32xf32> to vector<8x32xbf16>
    %cst_29 = arith.constant dense<0.000000e+00> : vector<8x128xf32>
    %49 = tpu.matmul %48, %46, %cst_29 {dimension_numbers = #tpu.dot_dimension_numbers<[1], [0], [0], [1], [0, 0, 1, 1], [], []>} : vector<8x32xbf16>, vector<32x128xbf16>, vector<8x128xf32> -> vector<8x128xf32>
    %50 = vector.broadcast %47 : vector<1x128xf32> to vector<8x128xf32>
    %51 = arith.addf %49, %50 : vector<8x128xf32>
    %c0_30 = arith.constant 0 : index
    %c0_31 = arith.constant 0 : index
    %52 = vector.load %arg10[%c0_30, %c0_31] : memref<8x128xf32, #tpu.memory_space<vmem>>, vector<8x128xf32>
    tpu.vector_store %arg10[%c0_30, %c0_31], %51 {strides = array<i32>} : memref<8x128xf32, #tpu.memory_space<vmem>>, vector<8x128xf32>,
    return
  }
  func.func @transform_0(%arg0: i32) -> (i32, i32) {
    %c0_i32 = arith.constant 0 : i32
    %c0_i32_0 = arith.constant 0 : i32
    return %arg0, %c0_i32 : i32, i32
  }
  func.func @transform_1(%arg0: i32) -> (i32, i32) {
    %c0_i32 = arith.constant 0 : i32
    %c0_i32_0 = arith.constant 0 : i32
    return %arg0, %c0_i32 : i32, i32
  }
  func.func @transform_2(%arg0: i32) -> (i32, i32) {
    %c0_i32 = arith.constant 0 : i32
    %c0_i32_0 = arith.constant 0 : i32
    %c0_i32_1 = arith.constant 0 : i32
    return %c0_i32, %c0_i32_0 : i32, i32
  }
  func.func @transform_3(%arg0: i32) -> (i32, i32) {
    %c0_i32 = arith.constant 0 : i32
    %c0_i32_0 = arith.constant 0 : i32
    %c0_i32_1 = arith.constant 0 : i32
    return %c0_i32, %c0_i32_0 : i32, i32
  }
  func.func @transform_4(%arg0: i32) -> (i32, i32) {
    %c0_i32 = arith.constant 0 : i32
    %c0_i32_0 = arith.constant 0 : i32
    %c0_i32_1 = arith.constant 0 : i32
    return %c0_i32, %c0_i32_0 : i32, i32
  }
  func.func @transform_5(%arg0: i32) -> (i32, i32) {
    %c0_i32 = arith.constant 0 : i32
    %c0_i32_0 = arith.constant 0 : i32
    %c0_i32_1 = arith.constant 0 : i32
    return %c0_i32, %c0_i32_0 : i32, i32
  }
  func.func @transform_6(%arg0: i32) -> (i32, i32) {
    %c0_i32 = arith.constant 0 : i32
    %c0_i32_0 = arith.constant 0 : i32
    %c0_i32_1 = arith.constant 0 : i32
    return %c0_i32, %c0_i32_0 : i32, i32
  }
  func.func @transform_7(%arg0: i32) -> (i32, i32) {
    %c0_i32 = arith.constant 0 : i32
    %c0_i32_0 = arith.constant 0 : i32
    %c0_i32_1 = arith.constant 0 : i32
    return %c0_i32, %c0_i32_0 : i32, i32
  }
  func.func @transform_8(%arg0: i32) -> (i32, i32) {
    %c0_i32 = arith.constant 0 : i32
    %c0_i32_0 = arith.constant 0 : i32
    %c0_i32_1 = arith.constant 0 : i32
    return %c0_i32, %c0_i32_0 : i32, i32
  }
  func.func @transform_9(%arg0: i32) -> (i32, i32) {
    %c0_i32 = arith.constant 0 : i32
    %c0_i32_0 = arith.constant 0 : i32
    return %arg0, %c0_i32 : i32, i32
  }
}

</mosaic_0001>

<bundles_post_ra>
// kernel: tpu_custom_call.1
= control target key start
LH: loop header
LB: loop body
LE: loop exit
PB: predicated region body
PF: predicated region fallthrough
CT: control target
= control target key end

     0   :  { %14 = vsyncpa [#allocation3], 0  ;;  %s716_s0 = inlined_call_operand.hbm [shape: f32[8,16], index: 0, kind: input, shape index: {}]   ;;  %s717_s1 = inlined_call_operand.hbm [shape: f32[8,8], index: 1, kind: input, shape index: {}]   ;;  %s718_s2 = inlined_call_operand.hbm [shape: f32[16,32], index: 2, kind: input, shape index: {}]   ;;  %s719_s3 = inlined_call_operand.vmem [shape: f32[8,32], index: 3, kind: input, shape index: {}]   ;;  %s720_s4 = inlined_call_operand.vmem [shape: f32[1,32], index: 4, kind: input, shape index: {}]   ;;  %s721_s5 = inlined_call_operand.hbm [shape: f32[32,32], index: 5, kind: input, shape index: {}]   ;;  %s722_s6 = inlined_call_operand.vmem [shape: f32[1,32], index: 6, kind: input, shape index: {}]   ;;  %s723_s7 = inlined_call_operand.hbm [shape: f32[32,128], index: 7, kind: input, shape index: {}]   ;;  %s724_s8 = inlined_call_operand.vmem [shape: f32[1,128], index: 8, kind: input, shape index: {}]   ;;  %s725_s9 = inlined_call_operand.hbm [shape: f32[8,128], index: 9, kind: output, shape index: {}]  }
   0x1   :  { %15 = vsyncpa [#allocation6], 0 }
   0x2   :  { %16 = vsyncpa [#allocation9], 0 }
   0x3   :  { %17 = vsyncpa [#allocation4], 0  ;;  %s557_s30 = smov [#allocation5]   ;;  %s417_s13 = scalar_lea.hbm %s717_s1, 128 }
   0x4   :  { %s34_s10 = sshll.u32 %s557_s30, 4  ;;  %p418_p0 = scmp.ne.s32.totalorder %s717_s1, %s417_s13  ;;  %s35_s10 = int_to_ptr.vmem [resolvable:$true] %s34_s10 }
   0x5   :  { %p421_p1 = scmp.lt.u32.totalorder %s417_s13, %s717_s1 }
   0x7   :  { %p423_p2 = pnand %p421_p1, %p418_p0 }
   0x9   :  { %426 = shalt.err (!%p423_p2)
}
   0xa   :  { %s427_s18 = scalar_lea.vmem %s35_s10, 128  ;;  %p432_p4 = scmp.lt.s32.totalorder %s35_s10, %s35_s10 }
   0xb   :  { %p428_p3 = scmp.ne.s32.totalorder %s35_s10, %s427_s18  ;;  %p433_p5 = scmp.lt.s32.totalorder %s427_s18, %s427_s18 }
   0xd   :  { %p434_p6 = por %p433_p5, %p432_p4 }
   0xf   :  { %p435_p7 = pnand %p434_p6, %p428_p3 }
  0x11   :  { %438 = shalt.err (!%p435_p7)
}
  0x12   :  { %37 = dma.hbm_to_vmem [thread:$0]  %s717_s1, 128, %s35_s10, [#allocation6]  }
  0x13   :  { %s558_s21 = smov [#allocation8]   ;;  %s559_s23 = smov [#allocation2]  }
  0x14   :  { %s59_s22 = sshll.u32 %s558_s21, 4  ;;  %s24_s24 = sshll.u32 %s559_s23, 4  ;;  %s60_s22 = int_to_ptr.vmem [resolvable:$true] %s59_s22  ;;  %s25_s24 = int_to_ptr.vmem [resolvable:$true] %s24_s24 }
  0x15   :  { %s439_s27 = scalar_lea.hbm %s721_s5, 512 }
  0x16   :  { %p440_p8 = scmp.ne.s32.totalorder %s721_s5, %s439_s27  ;;  %p443_p9 = scmp.lt.u32.totalorder %s439_s27, %s721_s5 }
  0x18   :  { %p445_p10 = pnand %p443_p9, %p440_p8 }
  0x1a   :  { %448 = shalt.err (!%p445_p10)
}
  0x1b   :  { %s449_s1 = scalar_lea.vmem %s60_s22, 512  ;;  %p454_p12 = scmp.lt.s32.totalorder %s60_s22, %s60_s22 }
  0x1c   :  { %p450_p11 = scmp.ne.s32.totalorder %s60_s22, %s449_s1  ;;  %p455_p13 = scmp.lt.s32.totalorder %s449_s1, %s449_s1 }
  0x1e   :  { %p456_p0 = por %p455_p13, %p454_p12 }
  0x20   :  { %p457_p1 = pnand %p456_p0, %p450_p11 }
  0x22   :  { %460 = shalt.err (!%p457_p1)
}
  0x23   :  { %s560_s10 = smov 128   ;;  %s561_s12 = smov 8  }
  0x24   :  { %65 = dma.hbm_to_vmem [thread:$0]  %s721_s5, 512, %s60_s22, [#allocation9], %s560_s10, %s560_s10, %s561_s12  }
  0x25   :  { %s461_s17 = scalar_lea.hbm %s716_s0, 128 }
  0x26   :  { %p462_p2 = scmp.ne.s32.totalorder %s716_s0, %s461_s17  ;;  %p465_p3 = scmp.lt.u32.totalorder %s461_s17, %s716_s0 }
  0x28   :  { %p467_p4 = pnand %p465_p3, %p462_p2 }
  0x2a   :  { %470 = shalt.err (!%p467_p4)
}
  0x2b   :  { %s471_s23 = scalar_lea.vmem %s25_s24, 128  ;;  %p476_p6 = scmp.lt.s32.totalorder %s25_s24, %s25_s24 }
  0x2c   :  { %p472_p5 = scmp.ne.s32.totalorder %s25_s24, %s471_s23  ;;  %p477_p7 = scmp.lt.s32.totalorder %s471_s23, %s471_s23 }
  0x2e   :  { %p478_p8 = por %p477_p7, %p476_p6 }
  0x30   :  { %p479_p9 = pnand %p478_p8, %p472_p5 }
  0x32   :  { %482 = shalt.err (!%p479_p9)
}
  0x33   :  { %27 = dma.hbm_to_vmem [thread:$0]  %s716_s0, 128, %s25_s24, [#allocation3]  }
  0x34   :  { %s562_s25 = smov [#allocation7]   ;;  %s563_s27 = smov [#allocation10]  }
  0x35   :  { %s43_s26 = sshll.u32 %s562_s25, 4  ;;  %s73_s28 = sshll.u32 %s563_s27, 4  ;;  %s44_s26 = int_to_ptr.vmem [resolvable:$true] %s43_s26  ;;  %s74_s28 = int_to_ptr.vmem [resolvable:$true] %s73_s28 }
  0x36   :  { %s483_s11 = scalar_lea.hbm %s718_s2, 256 }
  0x37   :  { %p484_p10 = scmp.ne.s32.totalorder %s718_s2, %s483_s11  ;;  %p487_p11 = scmp.lt.u32.totalorder %s483_s11, %s718_s2 }
  0x39   :  { %p489_p12 = pnand %p487_p11, %p484_p10 }
  0x3b   :  { %492 = shalt.err (!%p489_p12)
}
  0x3c   :  { %s493_s0 = scalar_lea.vmem %s44_s26, 256  ;;  %p498_p0 = scmp.lt.s32.totalorder %s44_s26, %s44_s26 }
  0x3d   :  { %p494_p13 = scmp.ne.s32.totalorder %s44_s26, %s493_s0  ;;  %p499_p1 = scmp.lt.s32.totalorder %s493_s0, %s493_s0 }
  0x3f   :  { %p500_p2 = por %p499_p1, %p498_p0 }
  0x41   :  { %p501_p3 = pnand %p500_p2, %p494_p13 }
  0x43   :  { %504 = shalt.err (!%p501_p3)
}
  0x44   :  { %49 = dma.hbm_to_vmem [thread:$0]  %s718_s2, 256, %s44_s26, [#allocation6], %s560_s10, %s560_s10, %s561_s12  }
  0x45   :  { %s505_s19 = scalar_lea.hbm %s723_s7, 512 }
  0x46   :  { %p506_p4 = scmp.ne.s32.totalorder %s723_s7, %s505_s19  ;;  %p509_p5 = scmp.lt.u32.totalorder %s505_s19, %s723_s7 }
  0x48   :  { %p511_p6 = pnand %p509_p5, %p506_p4 }
  0x4a   :  { %514 = shalt.err (!%p511_p6)
}
  0x4b   :  { %s515_s22 = scalar_lea.vmem %s74_s28, 512  ;;  %p520_p8 = scmp.lt.s32.totalorder %s74_s28, %s74_s28 }
  0x4c   :  { %p516_p7 = scmp.ne.s32.totalorder %s74_s28, %s515_s22  ;;  %p521_p9 = scmp.lt.s32.totalorder %s515_s22, %s515_s22 }
  0x4e   :  { %p522_p10 = por %p521_p9, %p520_p8 }
  0x50   :  { %p523_p11 = pnand %p522_p10, %p516_p7 }
  0x52   :  { %526 = shalt.err (!%p523_p11)
}
  0x53   :  { %79 = dma.hbm_to_vmem [thread:$0]  %s723_s7, 512, %s74_s28, [#allocation9], %s560_s10, %s560_s10, %s561_s12  }
  0x54   :  { %549 = dma.done.wait [#allocation3], 128  }
  0x55   :  { %550 = vsyncadd [#allocation3], 4294967168 }
  0x56   :  { %551 = dma.done.wait [#allocation6], 384  }
  0x57   :  { %552 = vsyncadd [#allocation6], 4294966912 }
  0x58   :  { %553 = dma.done.wait [#allocation9], 1024  }
  0x59   :  { %554 = vsyncadd [#allocation9], 4294966272  ;;  %v564_v0 = vmov 0.0   ;;  %vm565_vm0 = vmmov 0   ;;  %v100_v1 = vld [vmem:[#allocation7] sm:$0xff]  ;;  %v101_v2 = vld [vmem:[#allocation7 + $0x8] sm:$0xff] }
  0x5a   :  { %381 = vmatprep.subr.bf16.mxu1 %v564_v0  ;;  %375 = vmatprep.subr.bf16.mxu0 %v564_v0  ;;  %v105_v3 = vld [vmem:[%s719_s3] sm:$0xff]  ;;  %vm111_vm1 = vcmask 1043456   ;;  %v102_v4 = vpack.c.bf16 %v101_v2, %v100_v1  ;;  %v103_v7 = vld [vmem:[#allocation5] sm:$0xff]  ;;  %vm155_vm2 = vcmask 130048   ;;  %vm107_vm3 = vcmask 64512   ;;  %v217_v14 = vld [vmem:[#allocation8 + $0x10] sm:$0xff] }
  0x5b   :  { %383 = vmatprep.mubr.msk.bf16.mxu1 %vm565_vm0, %v564_v0  ;;  %377 = vmatprep.mubr.msk.bf16.mxu0 %vm565_vm0, %v564_v0  ;;  %v106_v5 = vpack.c.bf16 %v105_v3, %v105_v3  ;;  %v98_v6 = vld [vmem:[#allocation2] sm:$0xff]  ;;  %v104_v10 = vpack.c.bf16 %v103_v7, %v103_v7  ;;  %v216_v12 = vld [vmem:[#allocation8 + $0x8] sm:$0xff]  ;;  %v218_v15 = vld [vmem:[#allocation8 + $0x18] sm:$0xff]  ;;  %vm229_vm5 = vcmask 261120  }
  0x5c   :  { %v99_v8 = vpack.c.bf16 %v98_v6, %v98_v6  ;;  %382 = vmatpush3.bf16.msra.mxu1 %v102_v4  ;;  %v215_v11 = vld [vmem:[#allocation8] sm:$0xff]  ;;  %v220_v16 = vpack.c.bf16 %v218_v15, %v217_v14  ;;  %v282_v37 = vld [vmem:[#allocation10 + $0x8] sm:$0xff]  ;;  %v283_v39 = vld [vmem:[#allocation10 + $0x10] sm:$0xff] }
  0x5d   :  { %v113_v9 = vsel %vm111_vm1, %v106_v5, 0  ;;  %395 = vmatprep.subr.bf16.mxu1 %v564_v0  ;;  %v219_v13 = vpack.c.bf16 %v216_v12, %v215_v11  ;;  %v358_v19 = vld [vmem:[%s720_s4] ss:$0 sm:$0xff]  ;;  %v284_v40 = vld [vmem:[#allocation10 + $0x18] sm:$0xff] }
  0x5e   :  { %376 = vmatpush3.bf16.msra.mxu0 %v113_v9  ;;  %v281_v36 = vld [vmem:[#allocation10] sm:$0xff]  ;;  %v286_v41 = vpack.c.bf16 %v284_v40, %v283_v39 }
  0x5f   :  { %387 = vmatprep.subr.bf16.mxu0 %v564_v0  ;;  %384 = vmatmul.mubr.msk.bf16.vlgmr.msra.gmra.mrb[0].mxu1 %vm155_vm2, %v99_v8  ;;  %v285_v38 = vpack.c.bf16 %v282_v37, %v281_v36  ;;  %v360_v42 = vld [vmem:[%s722_s6] ss:$0 sm:$0xff]  ;;  %s566_s6 = smov [#allocation11]  }
  0x60   :  { %399 = vmatprep.mubr.msk.bf16.mxu1 %vm565_vm0, %v564_v0  ;;  %v363_v56 = vld [vmem:[%s724_s8] ss:$0 sm:$0xff]  ;;  %s345_s29 = sshll.u32 %s566_s6, 4  ;;  %s346_s29 = int_to_ptr.vmem [resolvable:$true] %s345_s29 }
  0x61   :  { %378 = vmatmul.mubr.msk.bf16.vlgmr.msra.gmra.mrb[0].mxu0 %vm107_vm3, %v104_v10  ;;  %396 = vmatpush3.bf16.msra.mxu1 %v285_v38  ;;  %s527_s30 = scalar_lea.vmem %s346_s29, 128  ;;  %p532_p13 = scmp.lt.s32.totalorder %s346_s29, %s346_s29 }
  0x62   :  { %391 = vmatprep.mubr.msk.bf16.mxu0 %vm565_vm0, %v564_v0  ;;  %388 = vmatpush3.bf16.msra.mxu0 %v219_v13  ;;  %p528_p12 = scmp.ne.s32.totalorder %s346_s29, %s527_s30  ;;  %p533_p0 = scmp.lt.s32.totalorder %s527_s30, %s527_s30 }
  0x63   :  { %389 = vmatprep.subr.bf16.mxu0 %v564_v0  ;;  %397 = vmatprep.subr.bf16.mxu1 %v564_v0 }
  0x64   :  { %p534_p1 = por %p533_p0, %p532_p13 }
  0x65   :  { %398 = vmatpush3.bf16.msra.mxu1 %v286_v41 }
  0x66   :  { %390 = vmatpush3.bf16.msra.mxu0 %v220_v16  ;;  %p535_p2 = pnand %p534_p1, %p528_p12 }
 0x132   :  { %v193_v17 = vpop.f32.mrb[0].mxu1 }
 0x133   :  { %v385_v20 = vpop.f32.mrb[1].mxu1 }
 0x134   :  { %v149_v18 = vpop.f32.mrb[0].mxu0  ;;  %v196_v23 = vpop.f32.mrb[2].mxu1 }
 0x135   :  { %v194_v21 = vadd.f32 %v193_v17, %v149_v18  ;;  %v379_v22 = vpop.f32.mrb[1].mxu0  ;;  %v386_v25 = vpop.f32.mrb[3].mxu1 }
 0x136   :  { %v152_v24 = vpop.f32.mrb[2].mxu0 }
 0x137   :  { %v206_v26 = vadd.f32 %v358_v19, %v194_v21  ;;  %v380_v27 = vpop.f32.mrb[3].mxu0 }
 0x139   :  { %v208_v28 = vmin.f32 %v206_v26, 0.0  ;;  %vm207_vm4 = vcmp.gt.f32.partialorder %v206_v26, 0.0 }
 0x13b   :  { %v209_v29 = vmul.f32 1.442695, %v208_v28 }
 0x13d   :  { %413 = vpow2.f32 %v209_v29 }
 0x147   :  { %v414_v30 = vpop.eup %413 }
 0x148   :  { %v359_v31 = vadd.f32 -1.0, %v414_v30 }
 0x14a   :  { %v212_v32 = vmul.f32 1.6732632, %v359_v31 }
 0x14c   :  { %v213_v33 = vsel %vm207_vm4, %v206_v26, %v212_v32 }
 0x14d   :  { %v214_v34 = vmul.f32 1.050701, %v213_v33 }
 0x14f   :  { %v222_v35 = vpack.c.bf16 %v214_v34, %v214_v34 }
 0x151   :  { %392 = vmatmul.mubr.msk.bf16.vlgmr.msra.gmra.mrb[4].mxu0 %vm229_vm5, %v222_v35 }
 0x224   :  { %v267_v43 = vpop.f32.mrb[4].mxu0 }
 0x225   :  { %v268_v44 = vadd.f32 %v360_v42, %v267_v43  ;;  %v393_v45 = vpop.f32.mrb[5].mxu0 }
 0x226   :  { %v270_v46 = vpop.f32.mrb[6].mxu0 }
 0x227   :  { %v274_v47 = vmin.f32 %v268_v44, 0.0  ;;  %v394_v48 = vpop.f32.mrb[7].mxu0  ;;  %vm273_vm6 = vcmp.gt.f32.partialorder %v268_v44, 0.0 }
 0x229   :  { %v275_v49 = vmul.f32 1.442695, %v274_v47 }
 0x22b   :  { %415 = vpow2.f32 %v275_v49 }
 0x235   :  { %v416_v50 = vpop.eup %415 }
 0x236   :  { %v362_v51 = vadd.f32 -1.0, %v416_v50 }
 0x238   :  { %v278_v52 = vmul.f32 1.6732632, %v362_v51 }
 0x23a   :  { %v279_v53 = vsel %vm273_vm6, %v268_v44, %v278_v52 }
 0x23b   :  { %v280_v54 = vmul.f32 1.050701, %v279_v53 }
 0x23d   :  { %v288_v55 = vpack.c.bf16 %v280_v54, %v280_v54 }
 0x23f   :  { %400 = vmatmul.mubr.msk.bf16.vlgmr.msra.gmra.mrb[4].mxu1 %vm229_vm5, %v288_v55 }
 0x312   :  { %v332_v57 = vpop.f32.mrb[4].mxu1 }
 0x313   :  { %v333_v58 = vadd.f32 %v363_v56, %v332_v57  ;;  %v401_v59 = vpop.f32.mrb[5].mxu1 }
 0x314   :  { %v335_v60 = vpop.f32.mrb[6].mxu1 }
 0x315   :  { %338 = vst [vmem:[#allocation11] sm:$0xff] %v333_v58  ;;  %v402_v61 = vpop.f32.mrb[7].mxu1 }
 0x316   :  { %538 = shalt.err (!%p535_p2)
}
 0x317   :  { %s539_s8 = scalar_lea.hbm %s725_s9, 128 }
 0x318   :  { %p540_p3 = scmp.ne.s32.totalorder %s725_s9, %s539_s8  ;;  %p543_p4 = scmp.lt.u32.totalorder %s539_s8, %s725_s9 }
 0x31a   :  { %p545_p5 = pnand %p543_p4, %p540_p3 }
 0x31c   :  { %548 = shalt.err (!%p545_p5)
}
 0x31d   :  { %348 = dma.vmem_to_hbm [thread:$0]  %s346_s29, 128, %s725_s9, [#allocation4]  }
 0x31e   :  { %555 = dma.done.wait [#allocation4], 128  }
 0x31f   :  { %556 = vsyncadd [#allocation4], 4294967168 }
 0x320   :  { %352 = vsyncpa [#allocation3], 1 }
 0x321   :  { %353 = vsyncpa [#allocation6], 1 }
 0x322   :  { %354 = vsyncpa [#allocation9], 1 }
 0x323   :  { %355 = vsyncpa [#allocation4], 1 }

</bundles_post_ra>
